<compile_context>
chip_gen: v5e
topology: v5e:2x2
jax: 0.10.0
libtpu: 0.0.40
codegen_flags: <defaults>
</compile_context>

<pallas_src>
import jax
import jax.numpy as jnp
from jax.experimental import pallas as pl
from jax.experimental.pallas import tpu as pltpu
import numpy as np

_LANES = 128                      # lane width of each block (last dim) -> unmasked vst
_TR_TARGET = 8192                 # 8192 rows x 128 lanes x 4 B = 4 MiB per f32 block
_MIN_GRID_STEPS = 4               # keep >= 4 steps for big inputs (2 TCs on v7x + pipeline)
_FAST_PATH_ELEMS = 256 * 1024     # below this, XLA-fused exp beats a pallas_call launch
_VMEM_LIMIT_BYTES = 32 * 1024 * 1024  # 4 MiB blocks x 2 arrays x 2 buffers = 16 MiB + headroom


# ----------------------------- Pallas kernel --------------------------------
def _gauss_kernel(scale_ref, d_ref, o_ref):
    # scale_ref: (1,) f32 in SMEM holding -1/(2*std^2)  (hoisted, loop-invariant)
    # d_ref / o_ref: (tr, 128) VMEM tiles (last grid step may be ragged; OOB masked)
    x = d_ref[...].astype(jnp.float32)
    o_ref[...] = jnp.exp(x * x * scale_ref[0]).astype(o_ref.dtype)


def _round_up(n, m):
    return ((n + m - 1) // m) * m


def _gauss_scale(std):
    # -1/(2*std^2). NOTE: std == 0 yields -inf scale -> NaN at d == 0 (mirrors the
    # division-by-zero behavior of the PyTorch module). Accepts python floats or arrays.
    std = jnp.asarray(std, jnp.float32).reshape(-1)[:1]
    return -0.5 / (std * std)


def gauss_pallas(d, std):
    """Elementwise Gaussian RBF: exp(d**2 / (-2*std**2)), streamed through Pallas."""
    orig_shape = d.shape
    dtype = d.dtype
    n = d.size
    itemsize = jnp.dtype(dtype).itemsize
    sub = 8 * max(1, 4 // itemsize)       # sublane multiple: 8 f32 / 16 bf16 / 32 i8

    nrows = pl.cdiv(n, _LANES)
    n_lane_pad = nrows * _LANES

    flat = d.reshape(-1)
    if n_lane_pad != n:
        # Only a <128-elem tail pad when n isn't lane-aligned (unavoidable for the 2-D view).
        flat = jnp.pad(flat, (0, n_lane_pad - n))
    x2d = flat.reshape(nrows, _LANES)

    # Row-block size: as large as possible (amortize ~0.35us/step overhead), but keep
    # >= _MIN_GRID_STEPS grid steps for large inputs so both v7x TCs get work.
    tr_for_steps = _round_up(max(1, -(-nrows // _MIN_GRID_STEPS)), sub)
    tr = max(sub, min(_round_up(_TR_TARGET, sub), tr_for_steps))
    grid = pl.cdiv(nrows, tr)             # ragged final block handled by Pallas masking

    scale = _gauss_scale(std)

    cost = pl.CostEstimate(
        flops=2 * n,                      # x*x and *scale per element
        transcendentals=n,                # one exp per element
        bytes_accessed=2 * nrows * _LANES * itemsize,
    )

    out2d = pl.pallas_call(
        _gauss_kernel,
        out_shape=jax.ShapeDtypeStruct((nrows, _LANES), dtype),
        grid_spec=pl.GridSpec(
            grid=(grid,),
            in_specs=[
                pl.BlockSpec(memory_space=pltpu.MemorySpace.SMEM),  # scale (1,) scalar
                pl.BlockSpec((tr, _LANES), lambda i: (i, 0)),       # d tile
            ],
            out_specs=pl.BlockSpec((tr, _LANES), lambda i: (i, 0)),
        ),
        compiler_params=pltpu.CompilerParams(
            dimension_semantics=("parallel",),       # shard row-tiles across TCs on v7x
            vmem_limit_bytes=_VMEM_LIMIT_BYTES,
        ),
        cost_estimate=cost,
    )(scale, x2d)

    out = out2d.reshape(-1)
    if n_lane_pad != n:
        out = out[:n]
    return out.reshape(orig_shape)


def gauss_forward(d, std):
    """Dispatcher: tiny tensors use plain XLA (launch overhead dominates); the rest
    streams through the Pallas kernel."""
    if d.size < _FAST_PATH_ELEMS:
        scale = _gauss_scale(std)
        x = d.astype(jnp.float32)
        return jnp.exp(x * x * scale[0]).astype(d.dtype)
    return gauss_pallas(d, std)


# ------------------------------ module wrapper -------------------------------
class GaussPallas:
    """JAX/Pallas equivalent of gauss(nn.Module): forward(d) = exp(d^2 / (-2*std^2))."""

    def __init__(self, std, requires_grad=True):
        # TODO(synk): nn.Parameter / autograd semantics of std are out of scope
        # (forward pass only); std is kept as a runtime (1,) f32 array.
        self.std = jnp.asarray([float(std)], jnp.float32)

    def __call__(self, d):
        return gauss_forward(d, self.std)


# ------------------------------ reference check ------------------------------
if __name__ == "__main__":
    key = jax.random.PRNGKey(0)
    std = 2.0
    mod = GaussPallas(std)

    def ref_fn(x):
        return jnp.exp(jnp.square(x.astype(jnp.float32)) / (-2.0 * std ** 2)).astype(x.dtype)

    # 1) Typical upstream shape from RBF_Conv2d: (B, out_ch, H_out, W_out); 6272 elems,
    #    lane-aligned (49 x 128). Exercise the Pallas path directly (forces the kernel
    #    to run even though the dispatcher would fast-path a tensor this small).
    k1, k2, k3 = jax.random.split(key, 3)
    d1 = jnp.abs(jax.random.normal(k1, (2, 16, 14, 14), jnp.float32)) * 2.0
    out1 = jax.block_until_ready(gauss_pallas(d1, mod.std))
    np.testing.assert_allclose(np.asarray(out1), np.asarray(ref_fn(d1)),
                               rtol=1e-5, atol=1e-6)

    # 2) Ragged size (1155 elems, not a multiple of 128): exercises the tail pad +
    #    slice path and the masked ragged final row-block.
    d2 = jax.random.normal(k2, (3, 5, 7, 11), jnp.float32) * 1.5
    out2 = jax.block_until_ready(gauss_pallas(d2, mod.std))
    np.testing.assert_allclose(np.asarray(out2), np.asarray(ref_fn(d2)),
                               rtol=1e-5, atol=1e-6)

    # 3) bfloat16 streaming (in-kernel f32 upcast for the exp).
    d3 = (jnp.abs(jax.random.normal(k3, (2, 8, 16, 16), jnp.float32)) * 2.0).astype(jnp.bfloat16)
    out3 = jax.block_until_ready(gauss_pallas(d3, mod.std))
    np.testing.assert_allclose(np.asarray(out3, dtype=np.float32),
                               np.asarray(ref_fn(d3), dtype=np.float32),
                               rtol=2e-2, atol=1e-2)

    # 4) Module-level call (dispatcher; small shape takes the XLA fast path by design).
    out4 = jax.block_until_ready(mod(d1))
    np.testing.assert_allclose(np.asarray(out4), np.asarray(ref_fn(d1)),
                               rtol=1e-5, atol=1e-6)

    print("KERNEL_OK")
</pallas_src>

<mosaic_0001>
module attributes {stable_mosaic.version = 11 : i64} {
  func.func @_gauss_kernel(%arg0: i32, %arg1: memref<1xf32, #tpu.memory_space<smem>>, %arg2: memref<16x128xf32, #tpu.memory_space<vmem>>, %arg3: memref<16x128xf32, #tpu.memory_space<vmem>>) attributes {dimension_semantics = [#tpu.dimension_semantics<parallel>], iteration_bounds = array<i64: 4>, scalar_prefetch = 0 : i64, scratch_operands = 0 : i64, tpu.core_type = #tpu.core_type<tc>, window_params = [{transform_indices = @transform_0, window_bounds = array<i64: 1>}, {transform_indices = @transform_1, window_bounds = array<i64: 16, 128>}, {transform_indices = @transform_2, window_bounds = array<i64: 16, 128>}]} {
    %c0 = arith.constant 0 : index
    %c0_0 = arith.constant 0 : index
    %0 = vector.load %arg2[%c0, %c0_0] : memref<16x128xf32, #tpu.memory_space<vmem>>, vector<16x128xf32>
    %1 = arith.mulf %0, %0 : vector<16x128xf32>
    %c0_1 = arith.constant 0 : index
    %2 = memref.load %arg1[%c0_1] : memref<1xf32, #tpu.memory_space<smem>>
    %3 = vector.broadcast %2 : f32 to vector<16x128xf32>
    %4 = arith.mulf %1, %3 : vector<16x128xf32>
    %5 = math.exp %4 : vector<16x128xf32>
    %c0_2 = arith.constant 0 : index
    %c0_3 = arith.constant 0 : index
    %6 = vector.load %arg3[%c0_2, %c0_3] : memref<16x128xf32, #tpu.memory_space<vmem>>, vector<16x128xf32>
    tpu.vector_store %arg3[%c0_2, %c0_3], %5 {strides = array<i32>} : memref<16x128xf32, #tpu.memory_space<vmem>>, vector<16x128xf32>,
    return
  }
  func.func @transform_0(%arg0: i32) -> i32 {
    %c0_i32 = arith.constant 0 : i32
    %c0_i32_0 = arith.constant 0 : i32
    return %c0_i32 : i32
  }
  func.func @transform_1(%arg0: i32) -> (i32, i32) {
    %c0_i32 = arith.constant 0 : i32
    %c0_i32_0 = arith.constant 0 : i32
    return %arg0, %c0_i32 : i32, i32
  }
  func.func @transform_2(%arg0: i32) -> (i32, i32) {
    %c0_i32 = arith.constant 0 : i32
    %c0_i32_0 = arith.constant 0 : i32
    return %arg0, %c0_i32 : i32, i32
  }
}

</mosaic_0001>

<bundles_post_ra>
// kernel: tpu_custom_call.1
= control target key start
LH: loop header
LB: loop body
LE: loop exit
PB: predicated region body
PF: predicated region fallthrough
CT: control target
= control target key end

     0   :  { %s675_s0 = inlined_call_operand.<no memory space> [shape: f32[1], index: 0, kind: input, shape index: {}]   ;;  %s676_s1 = inlined_call_operand.hbm [shape: f32[49,128], index: 1, kind: input, shape index: {}]   ;;  %s677_s2 = inlined_call_operand.hbm [shape: f32[49,128], index: 2, kind: output, shape index: {}]  }
   0x1   :  { %7 = sst [smem:[#allocation2]] %s675_s0 }
   0x2   :  { %8 = vsyncpa [#allocation4], 0 }
   0x3   :  { %10 = vsyncpa [#allocation4 + $0x1], 0 }
   0x4   :  { %11 = vsyncpa [#allocation5], 0 }
   0x5   :  { %13 = vsyncpa [#allocation5 + $0x1], 0  ;;  %s505_s11 = smov 0   ;;  %s507_s12 = smov 0  }
   0x6   :  { %s509_s13 = smov 0   ;;  %s511_s14 = smov 0  }
   0x7 LB: > { %s526_s0 = sadd.s32 4294967295, %s479_s14   ;;  %s292_s15 = sadd.s32 4294967294, %s479_s14   ;;  %s479_s14 = sphi %s511_s14, %s686_s14   ;;  %s475_s13 = sphi %s509_s13, %s685_s13   ;;  %s471_s12 = sphi %s507_s12, %s684_s12   ;;  %s467_s11 = sphi %s505_s11, %s683_s11  }
   0x8   : > { %s530_s16 = sadd.s32 1, %s479_s14   ;;  %s47_s17 = sadd.s32 1, %s475_s13 }
   0x9   : > { %s44_s18 = ssub.s32 %s479_s14, %s530_s16  ;;  %p54_p0 = scmp.ne.s32.totalorder %s475_s13, %s471_s12 }
   0xa   : > { %p45_p1 = scmp.eq.s32.totalorder %s44_s18, 0  ;;  %p55_p2 = scmp.eq.s32.totalorder %s479_s14, 0 }
   0xb   : > { %p60_p3 = scmp.ne.s32.totalorder %s471_s12, %s467_s11  ;;  %p61_p4 = scmp.eq.s32.totalorder %s526_s0, 0 }
   0xc   : > { %s542_s19 = scalar_select %p45_p1, %s475_s13, %s47_s17  }
   0xd   : > { %p56_p5 = por %p55_p2, %p54_p0  ;;  %p544_p6 = por %p61_p4, %p60_p3 }
   0xe   : > { %p84_p7 = scmp.eq.s32.totalorder %s526_s0, 3  ;;  %p90_p8 = scmp.eq.s32.totalorder %s292_s15, 3 }
   0xf   : > { %p294_p11 = scmp.ge.s32.totalorder %s479_s14, 4 }
  0x10   : > { %p549_p9 = por %p84_p7, %p54_p0  ;;  %p553_p10 = por %p90_p8, %p60_p3 }
  0x11   : > { %109 = sbr.rel (%p294_p11) target bundleno = 58 (0x3a), region = 20 }
  0x16   : > { %112 = sbr.rel (!%p56_p5) target bundleno = 58 (0x3a), region = 24  ;;  %s113_s23 = sand.u32 (%p56_p5), 1, %s475_s13  }
  0x17   : > { %s296_s24 = sshll.u32 (%p56_p5), %s479_s14, 1  ;;  %s295_s25 = sshll.u32 (%p56_p5), %s113_s23, 4 }
  0x18   : > { %s119_s26 = ssub.s32 (%p56_p5), 7, %s296_s24  ;;  %s563_s30 = scalar_lea.sflag (%p56_p5), [#allocation4], %s113_s23 }
  0x19   : > { %p120_p12 = scmp.lt.s32.totalorder (%p56_p5), %s119_s26, 2  ;;  %s117_s3 = scalar_lea.vmem (%p56_p5), [#allocation3], %s295_s25 }
  0x1b   : > { %s688_s26 = smov (!%p120_p12, %s119_s26), 2 }
  0x1c   : > { %s297_s27 = sshll.u32 %s688_s26, 3 }
  0x1d   : > { %s123_s28 = ssub.s32 16, %s297_s27 }
  0x1e   : > { %s124_s29 = sshll.u32 %s123_s28, 4 }
  0x1f   : > { %125 = vsyncadd %s563_s30, %s124_s29  ;;  %p566_p13 = scmp.ne.s32.totalorder %s297_s27, 0  ;;  %s314_s5 = sshll.u32 %s479_s14, 4 }
  0x20   : > { %s128_s8 = scalar_lea.hbm %s676_s1, %s314_s5  ;;  %s574_s9 = sshll.u32 %s117_s3, 4  ;;  %s133_s9 = int_to_ptr.vmem [resolvable:$true] %s574_s9 }
  0x21   : > { %s130_s10 = sshll.u32 %s128_s8, 4  ;;  %s301_s15 = sshll.u32 %s688_s26, 7  ;;  %s577_s10 = int_to_ptr.hbm [resolvable:$true] %s130_s10 }
  0x22   : > { %s363_s17 = sshra.s32 %s577_s10, 4  ;;  %s365_s18 = sshrl.u32 %s301_s15, 4  ;;  %s364_s17 = int_to_ptr.hbm [resolvable:$true] %s363_s17 }
  0x23   : > { %s370_s23 = scalar_lea.hbm %s364_s17, %s365_s18  ;;  %s374_s27 = scalar_lea.hbm %s676_s1, 56 }
  0x24   : > { %p371_p0 = scmp.ne.s32.totalorder %s364_s17, %s370_s23  ;;  %p375_p3 = scmp.lt.s32.totalorder %s364_s17, %s676_s1 }
  0x25   : > { %p376_p4 = scmp.lt.s32.totalorder %s374_s27, %s370_s23 }
  0x26   : > { %p372_p1 = pnand %p371_p0, %p566_p13 }
  0x27   : > { %p377_p5 = por %p376_p4, %p375_p3 }
  0x28   : > { %p373_p2 = pneg %p372_p1 }
  0x2a   : > { %p378_p7 = pnand %p377_p5, %p373_p2 }
  0x2c   : > { %381 = shalt.err (!%p378_p7)
}
  0x2d   : > { %s382_s3 = sshra.s32 %s133_s9, 4  ;;  %s481_s6 = smov [#allocation3]   ;;  %s383_s3 = int_to_ptr.vmem [resolvable:$true] %s382_s3 }
  0x2e   : > { %s389_s5 = scalar_lea.vmem %s383_s3, %s365_s18  ;;  %s393_s7 = scalar_lea.vmem %s481_s6, 32 }
  0x2f   : > { %p390_p8 = scmp.ne.s32.totalorder %s383_s3, %s389_s5  ;;  %p395_p0 = scmp.lt.s32.totalorder %s393_s7, %s389_s5 }
  0x31   : > { %p391_p11 = pnand %p390_p8, %p566_p13 }
  0x33   : > { %p392_p12 = pneg %p391_p11 }
  0x35   : > { %p397_p1 = pnand %p395_p0, %p392_p12 }
  0x37   : > { %400 = shalt.err (!%p397_p1)
}
  0x38   : > { %s482_s8 = smov 128   ;;  %s483_s17 = smov 8  }
  0x39   : > { %138 = dma.hbm_to_vmem [thread:$0]  (%p566_p13), %s577_s10, %s301_s15, %s133_s9, %s563_s30, %s482_s8, %s482_s8, %s483_s17  }
  0x3a PF: > { %p302_p2 = scmp.ge.s32.totalorder %s479_s14, 1  ;;  %p140_p3 = scmp.lt.s32.totalorder %s479_s14, 5 }
  0x3c   : > { %p141_p4 = pnand %p302_p2, %p140_p3 }
  0x3d   : > { %s606_s18 = sand.u32 (!%p141_p4), 1, %s471_s12  }
  0x3e   : > { %144 = sbr.rel (%p141_p4) target bundleno = 119 (0x77), region = 28  ;;  %s303_s23 = sshll.u32 (!%p141_p4), %s606_s18, 4 }
  0x3f   : > { %s147_s24 = scalar_lea.sflag (!%p141_p4), [#allocation4], %s606_s18  ;;  %s150_s4 = scalar_lea.vmem (!%p141_p4), [#allocation3], %s303_s23 }
  0x43   : > { %458 = dma.done.wait (%p544_p6), %s147_s24, 256  }
  0x44   : > { %460 = vsyncadd (%p544_p6), %s147_s24, 4294967040  ;;  %s186_s26 = sld [smem:[#allocation2]]  ;;  %v182_v0 = vld [vmem:[%s150_s4] sm:$0xff]  ;;  %v183_v1 = vld [vmem:[%s150_s4 + $0x8] sm:$0xff]  ;;  %s171_s30 = scalar_lea.vmem [#allocation6], %s303_s23 }
  0x45   : > { %v184_v3 = vmul.f32 %v182_v0, %v182_v0  ;;  %v185_v4 = vmul.f32 %v183_v1, %v183_v1  ;;  %s197_s20 = scalar_lea.sflag [#allocation5], %s606_s18  ;;  %s306_s9 = sshll.u32 (%p549_p9), %s526_s0, 1 }
  0x46   : > { %s205_s10 = ssub.s32 (%p549_p9), 7, %s306_s9 }
  0x47   : > { %p206_p6 = scmp.lt.s32.totalorder (%p549_p9), %s205_s10, 2 }
  0x4a   : > { %v187_v2 = vstv %s186_s26 }
  0x4b   : > { %v188_v5 = vmul.f32 %v187_v2, %v184_v3  ;;  %v189_v6 = vmul.f32 %v187_v2, %v185_v4 }
  0x4d   : > { %v190_v7 = vmul.f32 1.442695, %v188_v5  ;;  %v192_v8 = vmul.f32 1.442695, %v189_v6 }
  0x4f   : > { %359 = vpow2.f32 %v190_v7 }
  0x50   : > { %361 = vpow2.f32 %v192_v8 }
  0x53   : > { %203 = sbr.rel (!%p549_p9) target bundleno = 119 (0x77), region = 36 }
  0x55   : > { %v360_v9 = vpop.eup %359 }
  0x56   : > { %v362_v10 = vpop.eup %361  ;;  %194 = vst [vmem:[%s171_s30] sm:$0xff] %v360_v9 }
  0x57   : > { %195 = vst [vmem:[%s171_s30 + $0x8] sm:$0xff] %v362_v10 }
  0x58   : > { %s690_s10 = smov (!%p206_p6, %s205_s10), 2 }
  0x59   : > { %s307_s15 = sshll.u32 %s690_s10, 3 }
  0x5a   : > { %s209_s25 = ssub.s32 16, %s307_s15 }
  0x5b   : > { %s210_s27 = sshll.u32 %s209_s25, 4 }
  0x5c   : > { %211 = vsyncadd %s197_s20, %s210_s27  ;;  %p623_p13 = scmp.ne.s32.totalorder %s307_s15, 0  ;;  %s315_s21 = sshll.u32 %s526_s0, 4 }
  0x5d   : > { %s214_s5 = scalar_lea.hbm %s677_s2, %s315_s21  ;;  %s216_s6 = sshll.u32 %s171_s30, 4  ;;  %s631_s6 = int_to_ptr.vmem [resolvable:$true] %s216_s6 }
  0x5e   : > { %s218_s7 = sshll.u32 %s214_s5, 4  ;;  %s311_s8 = sshll.u32 %s690_s10, 7  ;;  %s633_s7 = int_to_ptr.hbm [resolvable:$true] %s218_s7 }
  0x5f   : > { %s402_s17 = sshra.s32 %s631_s6, 4  ;;  %s404_s23 = sshrl.u32 %s311_s8, 4  ;;  %s403_s17 = int_to_ptr.vmem [resolvable:$true] %s402_s17 }
  0x60   : > { %s409_s24 = scalar_lea.vmem %s403_s17, %s404_s23  ;;  %s484_s0 = smov [#allocation6]  }
  0x61   : > { %p410_p9 = scmp.ne.s32.totalorder %s403_s17, %s409_s24  ;;  %s413_s4 = scalar_lea.vmem %s484_s0, 32 }
  0x62   : > { %p415_p8 = scmp.lt.s32.totalorder %s413_s4, %s409_s24 }
  0x63   : > { %p411_p5 = pnand %p410_p9, %p623_p13 }
  0x65   : > { %p412_p7 = pneg %p411_p5 }
  0x67   : > { %p417_p11 = pnand %p415_p8, %p412_p7 }
  0x69   : > { %420 = shalt.err (!%p417_p11)
}
  0x6a   : > { %s421_s26 = sshra.s32 %s633_s7, 4  ;;  %s432_s25 = scalar_lea.hbm %s677_s2, 56  ;;  %s422_s26 = int_to_ptr.hbm [resolvable:$true] %s421_s26 }
  0x6b   : > { %s428_s30 = scalar_lea.hbm %s422_s26, %s404_s23  ;;  %p433_p2 = scmp.lt.s32.totalorder %s422_s26, %s677_s2 }
  0x6c   : > { %p429_p12 = scmp.ne.s32.totalorder %s422_s26, %s428_s30  ;;  %p434_p3 = scmp.lt.s32.totalorder %s432_s25, %s428_s30 }
  0x6e   : > { %p430_p0 = pnand %p429_p12, %p623_p13  ;;  %p435_p4 = por %p434_p3, %p433_p2 }
  0x70   : > { %p431_p1 = pneg %p430_p0 }
  0x72   : > { %p436_p6 = pnand %p435_p4, %p431_p1 }
  0x74   : > { %439 = shalt.err (!%p436_p6)
}
  0x75   : > { %s485_s29 = smov 128   ;;  %s486_s3 = smov 8  }
  0x76   : > { %224 = dma.vmem_to_hbm [thread:$0]  (%p623_p13), %s631_s6, %s311_s8, %s633_s7, %s197_s20, %s485_s29, %s485_s29, %s486_s3  }
  0x77 PF: > { %p322_p9 = scmp.ge.s32.totalorder %s479_s14, 2  ;;  %s233_s5 = sand.u32 1, %s467_s11  }
  0x78   : > { %s234_s17 = scalar_lea.sflag [#allocation5], %s233_s5 }
  0x79   : > { %p319_p5 = pnand %p322_p9, %p553_p10 }
  0x7b   : > { %p320_p7 = pneg %p319_p5 }
  0x7d   : > { %462 = dma.done.wait (%p320_p7), %s234_s17, 256  }
  0x7e   : > { %464 = vsyncadd (%p320_p7), %s234_s17, 4294967040  ;;  %p16_p8 = scmp.ge.s32.totalorder %s530_s16, 6   ;;  %s683_s11 = smov %s471_s12 }
  0x7f   : > { %s684_s12 = smov %s475_s13  ;;  %s685_s13 = smov %s542_s19 }
  0x80   : > { %s686_s14 = smov %s530_s16  ;;  %18 = sbr.rel (!%p16_p8) target bundleno = 7 (0x7), region = 73 }
  0x85   :  { %240 = vsyncpa [#allocation4], 1 }
  0x86   :  { %242 = vsyncpa [#allocation4 + $0x1], 1 }
  0x87   :  { %243 = vsyncpa [#allocation5], 1 }
  0x88   :  { %245 = vsyncpa [#allocation5 + $0x1], 1 }

</bundles_post_ra>
